<compile_context>
chip_gen: v6e
topology: v6e:2x2x1
jax: 0.10.0
libtpu: 0.0.40
codegen_flags: <defaults>
</compile_context>

<pallas_src>
import functools

import jax
import jax.numpy as jnp
import numpy as np
from jax import lax
from jax.experimental import pallas as pl
from jax.experimental.pallas import tpu as pltpu


# --------------------------------------------------------------------------- planning

def _vmem_capacity_bytes():
    """Physical per-core VMEM, with a conservative (v7x = 64 MiB) fallback."""
    try:
        info = pltpu.get_tpu_info()
        cap = getattr(info, "vmem_capacity_bytes", None)
        if cap:
            return int(cap)
    except Exception:
        pass
    return 64 << 20


def _plan_time_chunk(lx, b, n_a, n_dirs, cap=128):
    """Pick the time-chunk `tt` under a VMEM budget; pad Lx instead of forcing tt | Lx."""
    g = 4 * n_a
    phys = _vmem_capacity_bytes()
    budget = (phys * 2) // 5  # ~40% of physical for the pipelined blocks

    # Resident bytes: W_hh (f32, conservatively counted double-buffered) + h/c scratch.
    fixed = n_dirs * (2 * n_a * g * 4 + 2 * b * n_a * 4)

    def per_chunk(tt):
        # gx (bf16) and out (f32) blocks, each double-buffered, per direction.
        return n_dirs * 2 * tt * b * (g * 2 + n_a * 4)

    hi = max(1, min(cap, lx))
    feasible = [tt for tt in range(1, hi + 1) if fixed + per_chunk(tt) <= budget]
    if not feasible:
        feasible = [1]

    # Cost model: padded timesteps + ~4 step-equivalents of per-grid-step overhead.
    def cost(tt):
        nt = -(-lx // tt)
        return nt * tt + 4 * nt

    tt = min(feasible, key=lambda t: (cost(t), -t))
    lx_pad = -(-lx // tt) * tt
    need = fixed + per_chunk(tt)
    vmem_limit = int(min(max(2 * need, 32 << 20), max(phys - (16 << 20), 32 << 20)))
    return tt, lx_pad, vmem_limit


# --------------------------------------------------------------------------- kernel body

def _gate_consts(n_a):
    """Lane-masked vectors implementing tanh(x) = 2*sigmoid(2x) - 1 on the g-gate span."""
    g = 4 * n_a
    lane = lax.broadcasted_iota(jnp.int32, (1, g), 1)
    is_g = (lane >= 2 * n_a) & (lane < 3 * n_a)       # PyTorch gate order: i, f, g, o
    pre = jnp.where(is_g, 2.0, 1.0).astype(jnp.float32)     # pre-scale gate pre-acts
    post_m = jnp.where(is_g, 2.0, 1.0).astype(jnp.float32)  # post-scale sigmoid
    post_b = jnp.where(is_g, -1.0, 0.0).astype(jnp.float32)  # post-offset
    return pre, post_m, post_b


def _lstm_cell(gx_t, h, c, whh, consts, n_a):
    """One LSTM cell step.  gx_t: (B, 4*n_a) precomputed x-projection (bias folded in)."""
    pre, post_m, post_b = consts
    gates = gx_t.astype(jnp.float32) + jnp.dot(
        h, whh, preferred_element_type=jnp.float32)           # (B, 4*n_a) f32
    # Single EUP pass over the whole gate vreg; g-lanes become tanh via 2*sig(2x) - 1.
    act = jax.nn.sigmoid(gates * pre) * post_m + post_b
    i_g = act[:, 0 * n_a:1 * n_a]
    f_g = act[:, 1 * n_a:2 * n_a]
    g_g = act[:, 2 * n_a:3 * n_a]
    o_g = act[:, 3 * n_a:4 * n_a]
    c_new = f_g * c + i_g * g_g
    h_new = o_g * jnp.tanh(c_new)
    return h_new, c_new


def _lstm_uni_kernel(gx_ref, whh_ref, o_ref, h_scr, c_scr, *, n_a, tt):
    """One grid step == `tt` timesteps of a single forward LSTM chain."""
    @pl.when(pl.program_id(0) == 0)
    def _():
        h_scr[...] = jnp.zeros_like(h_scr)
        c_scr[...] = jnp.zeros_like(c_scr)

    whh = whh_ref[...]                               # (n_a, 4*n_a) f32, chunk-resident
    consts = _gate_consts(n_a)

    def step(i, carry):
        h, c = carry
        h, c = _lstm_cell(gx_ref[i], h, c, whh, consts, n_a)
        o_ref[i] = h.astype(o_ref.dtype)
        return h, c

    # Bounded unroll: enough scheduler window, no vreg-spill blowup at large B/n_a.
    h, c = lax.fori_loop(0, tt, step, (h_scr[...], c_scr[...]), unroll=min(tt, 8))
    h_scr[...] = h
    c_scr[...] = c


def _lstm_bidi_kernel(gxf_ref, gxb_ref, whf_ref, whb_ref, of_ref, ob_ref,
                      hf_scr, cf_scr, hb_scr, cb_scr, *, n_a, tt):
    """Fused bidirectional chunk: fwd + bwd chains interleaved in one timestep loop."""
    @pl.when(pl.program_id(0) == 0)
    def _():
        for r in (hf_scr, cf_scr, hb_scr, cb_scr):
            r[...] = jnp.zeros_like(r)

    whf = whf_ref[...]
    whb = whb_ref[...]
    consts = _gate_consts(n_a)

    def step(i, carry):
        hf, cf, hb, cb = carry
        j = tt - 1 - i
        # Two independent serial chains in the same iteration: the scheduler fills each
        # chain's MXU/EUP latency with the other's work (the single-core fusion win).
        hf, cf = _lstm_cell(gxf_ref[i], hf, cf, whf, consts, n_a)
        hb, cb = _lstm_cell(gxb_ref[j], hb, cb, whb, consts, n_a)
        of_ref[i] = hf.astype(of_ref.dtype)
        ob_ref[j] = hb.astype(ob_ref.dtype)
        return hf, cf, hb, cb

    hf, cf, hb, cb = lax.fori_loop(
        0, tt, step, (hf_scr[...], cf_scr[...], hb_scr[...], cb_scr[...]),
        unroll=min(tt, 8))
    hf_scr[...] = hf
    cf_scr[...] = cf
    hb_scr[...] = hb
    cb_scr[...] = cb


# --------------------------------------------------------------------------- pallas_call wrappers

def _run_uni(gx, whh_t, n_a, tt, vmem_limit):
    lx_pad, b, g = gx.shape
    nt = lx_pad // tt
    kernel = functools.partial(_lstm_uni_kernel, n_a=n_a, tt=tt)
    return pl.pallas_call(
        kernel,
        out_shape=jax.ShapeDtypeStruct((lx_pad, b, n_a), jnp.float32),
        grid=(nt,),
        in_specs=[
            pl.BlockSpec((tt, b, g), lambda t: (t, 0, 0)),
            pl.BlockSpec((n_a, g), lambda t: (0, 0)),
        ],
        out_specs=pl.BlockSpec((tt, b, n_a), lambda t: (t, 0, 0)),
        scratch_shapes=[
            pltpu.VMEM((b, n_a), jnp.float32),
            pltpu.VMEM((b, n_a), jnp.float32),
        ],
        compiler_params=pltpu.CompilerParams(
            dimension_semantics=("arbitrary",),
            vmem_limit_bytes=vmem_limit,
        ),
    )(gx, whh_t)


def _run_bidi(gxf, gxb, whf_t, whb_t, n_a, tt, vmem_limit):
    lx_pad, b, g = gxf.shape
    nt = lx_pad // tt
    kernel = functools.partial(_lstm_bidi_kernel, n_a=n_a, tt=tt)
    fwd = lambda t: (t, 0, 0)
    rev = lambda t: (nt - 1 - t, 0, 0)          # walk bwd-chain chunks back-to-front
    out_sd = jax.ShapeDtypeStruct((lx_pad, b, n_a), jnp.float32)
    return pl.pallas_call(
        kernel,
        out_shape=(out_sd, out_sd),
        grid=(nt,),
        in_specs=[
            pl.BlockSpec((tt, b, g), fwd),
            pl.BlockSpec((tt, b, g), rev),
            pl.BlockSpec((n_a, g), lambda t: (0, 0)),
            pl.BlockSpec((n_a, g), lambda t: (0, 0)),
        ],
        out_specs=(
            pl.BlockSpec((tt, b, n_a), fwd),
            pl.BlockSpec((tt, b, n_a), rev),
        ),
        scratch_shapes=[pltpu.VMEM((b, n_a), jnp.float32)] * 4,
        compiler_params=pltpu.CompilerParams(
            dimension_semantics=("arbitrary",),
            vmem_limit_bytes=vmem_limit,
        ),
    )(gxf, gxb, whf_t, whb_t)


# --------------------------------------------------------------------------- module wrapper

class PreAttnEncoderPallas:
    """Pallas port of PreAttnEncoder (single-layer nn.LSTM, batch_first=True)."""

    def __init__(self, dim_x, n_a, dropout_rate=0.2, bidirectional_encoder=False,
                 key=jax.random.PRNGKey(0), max_time_chunk=128):
        self.dim_x = dim_x
        self.n_a = n_a
        self.bidirectional_encoder = bidirectional_encoder
        self.max_time_chunk = max_time_chunk
        self.dropout_rate = dropout_rate  # intentionally unused (single-layer LSTM)
        # PyTorch nn.LSTM default init: U(-1/sqrt(n_a), 1/sqrt(n_a))
        bound = 1.0 / np.sqrt(n_a)
        n_dirs = 2 if bidirectional_encoder else 1
        keys = jax.random.split(key, 4 * n_dirs)
        self.params = []
        for d in range(n_dirs):
            k0, k1, k2, k3 = keys[4 * d:4 * d + 4]
            w_ih = jax.random.uniform(k0, (4 * n_a, dim_x), jnp.float32, -bound, bound)
            w_hh = jax.random.uniform(k1, (4 * n_a, n_a), jnp.float32, -bound, bound)
            b_ih = jax.random.uniform(k2, (4 * n_a,), jnp.float32, -bound, bound)
            b_hh = jax.random.uniform(k3, (4 * n_a,), jnp.float32, -bound, bound)
            self.params.append((w_ih, w_hh, b_ih, b_hh))

    def _gate_proj(self, x_tm_pad, w_ih, b_ih, b_hh):
        # Hoisted input projection for ALL timesteps, produced directly time-major,
        # streamed to the kernel in bf16 (dominant HBM read / VMEM block).
        gx = jnp.einsum("lbd,gd->lbg", x_tm_pad, w_ih) + (b_ih + b_hh)
        return gx.astype(jnp.bfloat16)

    def __call__(self, x):
        """x: (B, Lx, dim_x) -> (B, Lx, n_a) or (B, Lx, 2*n_a) if bidirectional."""
        x = jnp.asarray(x, jnp.float32)
        b, lx, _ = x.shape
        n_dirs = 2 if self.bidirectional_encoder else 1
        tt, lx_pad, vmem_limit = _plan_time_chunk(
            lx, b, self.n_a, n_dirs, cap=self.max_time_chunk)
        pad = lx_pad - lx

        x_tm = jnp.transpose(x, (1, 0, 2))  # (Lx, B, dim_x) — small, one pass over x

        if not self.bidirectional_encoder:
            w_ih, w_hh, b_ih, b_hh = self.params[0]
            x_f = jnp.pad(x_tm, ((0, pad), (0, 0), (0, 0))) if pad else x_tm
            gx_f = self._gate_proj(x_f, w_ih, b_ih, b_hh)
            out = _run_uni(gx_f, jnp.transpose(w_hh), self.n_a, tt, vmem_limit)[:lx]
            return jnp.transpose(out, (1, 0, 2))

        (wif, whf, bif, bhf), (wib, whb, bib, bhb) = self.params
        # Forward chain: pad at the tail (padding processed after all real timesteps).
        x_f = jnp.pad(x_tm, ((0, pad), (0, 0), (0, 0))) if pad else x_tm
        # Backward chain walks time back-to-front: pad at the head (processed last).
        x_b = jnp.pad(x_tm, ((pad, 0), (0, 0), (0, 0))) if pad else x_tm
        gx_f = self._gate_proj(x_f, wif, bif, bhf)
        gx_b = self._gate_proj(x_b, wib, bib, bhb)
        of, ob = _run_bidi(gx_f, gx_b, jnp.transpose(whf), jnp.transpose(whb),
                           self.n_a, tt, vmem_limit)
        of = of[:lx]
        ob = ob[pad:]
        # Single fused transpose + concat back to batch_first.
        return jnp.concatenate(
            [jnp.transpose(of, (1, 0, 2)), jnp.transpose(ob, (1, 0, 2))], axis=-1)


# --------------------------------------------------------------------------- reference + test

def _lstm_reference(x, w_ih, w_hh, b_ih, b_hh, n_a):
    """Pure-JAX f32 reference (lax.scan), batch_first in -> batch_first out."""
    bsz = x.shape[0]
    wih_t, whh_t = w_ih.T, w_hh.T
    bias = b_ih + b_hh

    def step(carry, x_t):
        h, c = carry
        gates = x_t @ wih_t + h @ whh_t + bias
        i = jax.nn.sigmoid(gates[:, 0 * n_a:1 * n_a])
        f = jax.nn.sigmoid(gates[:, 1 * n_a:2 * n_a])
        g = jnp.tanh(gates[:, 2 * n_a:3 * n_a])
        o = jax.nn.sigmoid(gates[:, 3 * n_a:4 * n_a])
        c = f * c + i * g
        h = o * jnp.tanh(c)
        return (h, c), h

    h0 = jnp.zeros((bsz, n_a), jnp.float32)
    c0 = jnp.zeros((bsz, n_a), jnp.float32)
    _, hs = lax.scan(step, (h0, c0), jnp.transpose(x, (1, 0, 2)))
    return jnp.transpose(hs, (1, 0, 2))


if __name__ == "__main__":
    batch, Lx, dim_x, n_a = 2, 8, 8, 32

    key = jax.random.PRNGKey(0)
    kx, kp, kp2, kx2 = jax.random.split(key, 4)
    x = jax.random.normal(kx, (batch, Lx, dim_x), jnp.float32)

    # --- unidirectional ---
    enc = PreAttnEncoderPallas(dim_x=dim_x, n_a=n_a, bidirectional_encoder=False, key=kp)
    a = jax.block_until_ready(enc(x))
    assert a.shape == (batch, Lx, n_a), a.shape
    a_ref = _lstm_reference(x, *enc.params[0], n_a)
    # gx is streamed in bf16 (recurrent matmul stays f32) => slightly loosened tolerance.
    np.testing.assert_allclose(np.asarray(a), np.asarray(a_ref), rtol=2e-2, atol=2e-2)

    # --- bidirectional (single fused fwd/bwd kernel) ---
    enc2 = PreAttnEncoderPallas(dim_x=dim_x, n_a=n_a, bidirectional_encoder=True, key=kp2)
    a2 = jax.block_until_ready(enc2(x))
    assert a2.shape == (batch, Lx, 2 * n_a), a2.shape
    fwd_ref = _lstm_reference(x, *enc2.params[0], n_a)
    bwd_ref = _lstm_reference(x[:, ::-1], *enc2.params[1], n_a)[:, ::-1]
    a2_ref = jnp.concatenate([fwd_ref, bwd_ref], axis=-1)
    np.testing.assert_allclose(np.asarray(a2), np.asarray(a2_ref), rtol=2e-2, atol=2e-2)

    # --- awkward Lx: exercise the time-padding path (tt does NOT divide Lx) ---
    Lx3 = 7
    x3 = jax.random.normal(kx2, (batch, Lx3, dim_x), jnp.float32)
    enc3 = PreAttnEncoderPallas(dim_x=dim_x, n_a=n_a, bidirectional_encoder=True,
                                key=kp2, max_time_chunk=4)
    a3 = jax.block_until_ready(enc3(x3))
    assert a3.shape == (batch, Lx3, 2 * n_a), a3.shape
    fwd3 = _lstm_reference(x3, *enc3.params[0], n_a)
    bwd3 = _lstm_reference(x3[:, ::-1], *enc3.params[1], n_a)[:, ::-1]
    a3_ref = jnp.concatenate([fwd3, bwd3], axis=-1)
    np.testing.assert_allclose(np.asarray(a3), np.asarray(a3_ref), rtol=2e-2, atol=2e-2)

    print("KERNEL_OK")
</pallas_src>

<mosaic_0001>
module attributes {stable_mosaic.version = 11 : i64} {
  func.func @_lstm_uni_kernel(%arg0: i32, %arg1: memref<8x2x128xbf16, #tpu.memory_space<vmem>>, %arg2: memref<32x128xf32, #tpu.memory_space<vmem>>, %arg3: memref<8x2x32xf32, #tpu.memory_space<vmem>>, %arg4: memref<2x32xf32, #tpu.memory_space<vmem>>, %arg5: memref<2x32xf32, #tpu.memory_space<vmem>>) attributes {dimension_semantics = [#tpu.dimension_semantics<arbitrary>], iteration_bounds = array<i64: 1>, scalar_prefetch = 0 : i64, scratch_operands = 2 : i64, tpu.core_type = #tpu.core_type<tc>, window_params = [{transform_indices = @transform_0, window_bounds = array<i64: 8, 2, 128>}, {pipeline_mode = #tpu.pipeline_mode<synchronous>, transform_indices = @transform_1, window_bounds = array<i64: 32, 128>}, {transform_indices = @transform_2, window_bounds = array<i64: 8, 2, 32>}]} {
    %c0_i32 = arith.constant 0 : i32
    %0 = arith.cmpi eq, %arg0, %c0_i32 : i32
    %1 = arith.extui %0 : i1 to i32
    %c0_i32_0 = arith.constant 0 : i32
    %2 = arith.cmpi ne, %1, %c0_i32_0 : i32
    scf.if %2 {
      %cst_64 = arith.constant 0.000000e+00 : f32
      %263 = vector.broadcast %cst_64 : f32 to vector<2x32xf32>
      %c0_65 = arith.constant 0 : index
      %c0_66 = arith.constant 0 : index
      %264 = vector.load %arg4[%c0_65, %c0_66] : memref<2x32xf32, #tpu.memory_space<vmem>>, vector<2x32xf32>
      tpu.vector_store %arg4[%c0_65, %c0_66], %263 {strides = array<i32>} : memref<2x32xf32, #tpu.memory_space<vmem>>, vector<2x32xf32>,
      %cst_67 = arith.constant 0.000000e+00 : f32
      %265 = vector.broadcast %cst_67 : f32 to vector<2x32xf32>
      %c0_68 = arith.constant 0 : index
      %c0_69 = arith.constant 0 : index
      %266 = vector.load %arg5[%c0_68, %c0_69] : memref<2x32xf32, #tpu.memory_space<vmem>>, vector<2x32xf32>
      tpu.vector_store %arg5[%c0_68, %c0_69], %265 {strides = array<i32>} : memref<2x32xf32, #tpu.memory_space<vmem>>, vector<2x32xf32>,
    } else {
    }
    %c0 = arith.constant 0 : index
    %c0_1 = arith.constant 0 : index
    %3 = vector.load %arg2[%c0, %c0_1] : memref<32x128xf32, #tpu.memory_space<vmem>>, vector<32x128xf32>
    %4 = tpu.iota {dimensions = array<i32: 1>} : vector<1x128xi32>
    %c64_i32 = arith.constant 64 : i32
    %5 = vector.broadcast %c64_i32 : i32 to vector<1x128xi32>
    %6 = arith.cmpi sge, %4, %5 : vector<1x128xi32>
    %c96_i32 = arith.constant 96 : i32
    %7 = vector.broadcast %c96_i32 : i32 to vector<1x128xi32>
    %8 = arith.cmpi slt, %4, %7 : vector<1x128xi32>
    %9 = arith.andi %6, %8 : vector<1x128xi1>
    %cst = arith.constant 2.000000e+00 : f32
    %cst_2 = arith.constant 1.000000e+00 : f32
    %10 = vector.broadcast %cst : f32 to vector<1x128xf32>
    %11 = vector.broadcast %cst_2 : f32 to vector<1x128xf32>
    %12 = arith.select %9, %10, %11 : vector<1x128xi1>, vector<1x128xf32>
    %cst_3 = arith.constant 2.000000e+00 : f32
    %cst_4 = arith.constant 1.000000e+00 : f32
    %13 = vector.broadcast %cst_3 : f32 to vector<1x128xf32>
    %14 = vector.broadcast %cst_4 : f32 to vector<1x128xf32>
    %15 = arith.select %9, %13, %14 : vector<1x128xi1>, vector<1x128xf32>
    %cst_5 = arith.constant -1.000000e+00 : f32
    %cst_6 = arith.constant 0.000000e+00 : f32
    %16 = vector.broadcast %cst_5 : f32 to vector<1x128xf32>
    %17 = vector.broadcast %cst_6 : f32 to vector<1x128xf32>
    %18 = arith.select %9, %16, %17 : vector<1x128xi1>, vector<1x128xf32>
    %c0_7 = arith.constant 0 : index
    %c0_8 = arith.constant 0 : index
    %19 = vector.load %arg4[%c0_7, %c0_8] : memref<2x32xf32, #tpu.memory_space<vmem>>, vector<2x32xf32>
    %c0_9 = arith.constant 0 : index
    %c0_10 = arith.constant 0 : index
    %20 = vector.load %arg5[%c0_9, %c0_10] : memref<2x32xf32, #tpu.memory_space<vmem>>, vector<2x32xf32>
    %c0_i32_11 = arith.constant 0 : i32
    %21 = arith.index_cast %c0_i32_11 : i32 to index
    %c0_12 = arith.constant 0 : index
    %c0_13 = arith.constant 0 : index
    %22 = vector.load %arg1[%21, %c0_12, %c0_13] : memref<8x2x128xbf16, #tpu.memory_space<vmem>>, vector<1x2x128xbf16>
    %23 = vector.shape_cast %22 : vector<1x2x128xbf16> to vector<2x128xbf16>
    %24 = arith.extf %23 : vector<2x128xbf16> to vector<2x128xf32>
    %cst_14 = arith.constant dense<0.000000e+00> : vector<2x128xf32>
    %25 = tpu.matmul %19, %3, %cst_14 {dimension_numbers = #tpu.dot_dimension_numbers<[1], [0], [0], [1], [0, 0, 1, 1], [], []>} : vector<2x32xf32>, vector<32x128xf32>, vector<2x128xf32> -> vector<2x128xf32>
    %26 = arith.addf %24, %25 : vector<2x128xf32>
    %27 = vector.broadcast %12 : vector<1x128xf32> to vector<2x128xf32>
    %28 = arith.mulf %26, %27 : vector<2x128xf32>
    %29 = arith.negf %28 : vector<2x128xf32>
    %30 = math.exp %29 : vector<2x128xf32>
    %cst_15 = arith.constant 1.000000e+00 : f32
    %31 = vector.broadcast %cst_15 : f32 to vector<2x128xf32>
    %32 = arith.addf %31, %30 : vector<2x128xf32>
    %33 = arith.divf %31, %32 : vector<2x128xf32>
    %34 = vector.broadcast %15 : vector<1x128xf32> to vector<2x128xf32>
    %35 = arith.mulf %33, %34 : vector<2x128xf32>
    %36 = vector.broadcast %18 : vector<1x128xf32> to vector<2x128xf32>
    %37 = arith.addf %35, %36 : vector<2x128xf32>
    %38 = vector.extract_strided_slice %37 {offsets = [0, 0], sizes = [2, 32], strides = [1, 1]} : vector<2x128xf32> to vector<2x32xf32>
    %39 = vector.extract_strided_slice %37 {offsets = [0, 32], sizes = [2, 32], strides = [1, 1]} : vector<2x128xf32> to vector<2x32xf32>
    %40 = vector.extract_strided_slice %37 {offsets = [0, 64], sizes = [2, 32], strides = [1, 1]} : vector<2x128xf32> to vector<2x32xf32>
    %41 = vector.extract_strided_slice %37 {offsets = [0, 96], sizes = [2, 32], strides = [1, 1]} : vector<2x128xf32> to vector<2x32xf32>
    %42 = arith.mulf %39, %20 : vector<2x32xf32>
    %43 = arith.mulf %38, %40 : vector<2x32xf32>
    %44 = arith.addf %42, %43 : vector<2x32xf32>
    %45 = math.tanh %44 : vector<2x32xf32>
    %46 = arith.mulf %41, %45 : vector<2x32xf32>
    %47 = arith.index_cast %c0_i32_11 : i32 to index
    %c0_16 = arith.constant 0 : index
    %c0_17 = arith.constant 0 : index
    %48 = vector.load %arg3[%47, %c0_16, %c0_17] : memref<8x2x32xf32, #tpu.memory_space<vmem>>, vector<1x2x32xf32>
    %49 = vector.shape_cast %48 : vector<1x2x32xf32> to vector<2x32xf32>
    %50 = vector.shape_cast %46 : vector<2x32xf32> to vector<1x2x32xf32>
    tpu.vector_store %arg3[%47, %c0_16, %c0_17], %50 {strides = array<i32>} : memref<8x2x32xf32, #tpu.memory_space<vmem>>, vector<1x2x32xf32>,
    %c1_i32 = arith.constant 1 : i32
    %51 = arith.index_cast %c1_i32 : i32 to index
    %c0_18 = arith.constant 0 : index
    %c0_19 = arith.constant 0 : index
    %52 = vector.load %arg1[%51, %c0_18, %c0_19] : memref<8x2x128xbf16, #tpu.memory_space<vmem>>, vector<1x2x128xbf16>
    %53 = vector.shape_cast %52 : vector<1x2x128xbf16> to vector<2x128xbf16>
    %54 = arith.extf %53 : vector<2x128xbf16> to vector<2x128xf32>
    %cst_20 = arith.constant dense<0.000000e+00> : vector<2x128xf32>
    %55 = tpu.matmul %46, %3, %cst_20 {dimension_numbers = #tpu.dot_dimension_numbers<[1], [0], [0], [1], [0, 0, 1, 1], [], []>} : vector<2x32xf32>, vector<32x128xf32>, vector<2x128xf32> -> vector<2x128xf32>
    %56 = arith.addf %54, %55 : vector<2x128xf32>
    %57 = vector.broadcast %12 : vector<1x128xf32> to vector<2x128xf32>
    %58 = arith.mulf %56, %57 : vector<2x128xf32>
    %59 = arith.negf %58 : vector<2x128xf32>
    %60 = math.exp %59 : vector<2x128xf32>
    %cst_21 = arith.constant 1.000000e+00 : f32
    %61 = vector.broadcast %cst_21 : f32 to vector<2x128xf32>
    %62 = arith.addf %61, %60 : vector<2x128xf32>
    %63 = arith.divf %61, %62 : vector<2x128xf32>
    %64 = vector.broadcast %15 : vector<1x128xf32> to vector<2x128xf32>
    %65 = arith.mulf %63, %64 : vector<2x128xf32>
    %66 = vector.broadcast %18 : vector<1x128xf32> to vector<2x128xf32>
    %67 = arith.addf %65, %66 : vector<2x128xf32>
    %68 = vector.extract_strided_slice %67 {offsets = [0, 0], sizes = [2, 32], strides = [1, 1]} : vector<2x128xf32> to vector<2x32xf32>
    %69 = vector.extract_strided_slice %67 {offsets = [0, 32], sizes = [2, 32], strides = [1, 1]} : vector<2x128xf32> to vector<2x32xf32>
    %70 = vector.extract_strided_slice %67 {offsets = [0, 64], sizes = [2, 32], strides = [1, 1]} : vector<2x128xf32> to vector<2x32xf32>
    %71 = vector.extract_strided_slice %67 {offsets = [0, 96], sizes = [2, 32], strides = [1, 1]} : vector<2x128xf32> to vector<2x32xf32>
    %72 = arith.mulf %69, %44 : vector<2x32xf32>
    %73 = arith.mulf %68, %70 : vector<2x32xf32>
    %74 = arith.addf %72, %73 : vector<2x32xf32>
    %75 = math.tanh %74 : vector<2x32xf32>
    %76 = arith.mulf %71, %75 : vector<2x32xf32>
    %77 = arith.index_cast %c1_i32 : i32 to index
    %c0_22 = arith.constant 0 : index
    %c0_23 = arith.constant 0 : index
    %78 = vector.load %arg3[%77, %c0_22, %c0_23] : memref<8x2x32xf32, #tpu.memory_space<vmem>>, vector<1x2x32xf32>
    %79 = vector.shape_cast %78 : vector<1x2x32xf32> to vector<2x32xf32>
    %80 = vector.shape_cast %76 : vector<2x32xf32> to vector<1x2x32xf32>
    tpu.vector_store %arg3[%77, %c0_22, %c0_23], %80 {strides = array<i32>} : memref<8x2x32xf32, #tpu.memory_space<vmem>>, vector<1x2x32xf32>,
    %c2_i32 = arith.constant 2 : i32
    %81 = arith.index_cast %c2_i32 : i32 to index
    %c0_24 = arith.constant 0 : index
    %c0_25 = arith.constant 0 : index
    %82 = vector.load %arg1[%81, %c0_24, %c0_25] : memref<8x2x128xbf16, #tpu.memory_space<vmem>>, vector<1x2x128xbf16>
    %83 = vector.shape_cast %82 : vector<1x2x128xbf16> to vector<2x128xbf16>
    %84 = arith.extf %83 : vector<2x128xbf16> to vector<2x128xf32>
    %cst_26 = arith.constant dense<0.000000e+00> : vector<2x128xf32>
    %85 = tpu.matmul %76, %3, %cst_26 {dimension_numbers = #tpu.dot_dimension_numbers<[1], [0], [0], [1], [0, 0, 1, 1], [], []>} : vector<2x32xf32>, vector<32x128xf32>, vector<2x128xf32> -> vector<2x128xf32>
    %86 = arith.addf %84, %85 : vector<2x128xf32>
    %87 = vector.broadcast %12 : vector<1x128xf32> to vector<2x128xf32>
    %88 = arith.mulf %86, %87 : vector<2x128xf32>
    %89 = arith.negf %88 : vector<2x128xf32>
    %90 = math.exp %89 : vector<2x128xf32>
    %cst_27 = arith.constant 1.000000e+00 : f32
    %91 = vector.broadcast %cst_27 : f32 to vector<2x128xf32>
    %92 = arith.addf %91, %90 : vector<2x128xf32>
    %93 = arith.divf %91, %92 : vector<2x128xf32>
    %94 = vector.broadcast %15 : vector<1x128xf32> to vector<2x128xf32>
    %95 = arith.mulf %93, %94 : vector<2x128xf32>
    %96 = vector.broadcast %18 : vector<1x128xf32> to vector<2x128xf32>
    %97 = arith.addf %95, %96 : vector<2x128xf32>
    %98 = vector.extract_strided_slice %97 {offsets = [0, 0], sizes = [2, 32], strides = [1, 1]} : vector<2x128xf32> to vector<2x32xf32>
    %99 = vector.extract_strided_slice %97 {offsets = [0, 32], sizes = [2, 32], strides = [1, 1]} : vector<2x128xf32> to vector<2x32xf32>
    %100 = vector.extract_strided_slice %97 {offsets = [0, 64], sizes = [2, 32], strides = [1, 1]} : vector<2x128xf32> to vector<2x32xf32>
    %101 = vector.extract_strided_slice %97 {offsets = [0, 96], sizes = [2, 32], strides = [1, 1]} : vector<2x128xf32> to vector<2x32xf32>
    %102 = arith.mulf %99, %74 : vector<2x32xf32>
    %103 = arith.mulf %98, %100 : vector<2x32xf32>
    %104 = arith.addf %102, %103 : vector<2x32xf32>
    %105 = math.tanh %104 : vector<2x32xf32>
    %106 = arith.mulf %101, %105 : vector<2x32xf32>
    %107 = arith.index_cast %c2_i32 : i32 to index
    %c0_28 = arith.constant 0 : index
    %c0_29 = arith.constant 0 : index
    %108 = vector.load %arg3[%107, %c0_28, %c0_29] : memref<8x2x32xf32, #tpu.memory_space<vmem>>, vector<1x2x32xf32>
    %109 = vector.shape_cast %108 : vector<1x2x32xf32> to vector<2x32xf32>
    %110 = vector.shape_cast %106 : vector<2x32xf32> to vector<1x2x32xf32>
    tpu.vector_store %arg3[%107, %c0_28, %c0_29], %110 {strides = array<i32>} : memref<8x2x32xf32, #tpu.memory_space<vmem>>, vector<1x2x32xf32>,
    %c3_i32 = arith.constant 3 : i32
    %111 = arith.index_cast %c3_i32 : i32 to index
    %c0_30 = arith.constant 0 : index
    %c0_31 = arith.constant 0 : index
    %112 = vector.load %arg1[%111, %c0_30, %c0_31] : memref<8x2x128xbf16, #tpu.memory_space<vmem>>, vector<1x2x128xbf16>
    %113 = vector.shape_cast %112 : vector<1x2x128xbf16> to vector<2x128xbf16>
    %114 = arith.extf %113 : vector<2x128xbf16> to vector<2x128xf32>
    %cst_32 = arith.constant dense<0.000000e+00> : vector<2x128xf32>
    %115 = tpu.matmul %106, %3, %cst_32 {dimension_numbers = #tpu.dot_dimension_numbers<[1], [0], [0], [1], [0, 0, 1, 1], [], []>} : vector<2x32xf32>, vector<32x128xf32>, vector<2x128xf32> -> vector<2x128xf32>
    %116 = arith.addf %114, %115 : vector<2x128xf32>
    %117 = vector.broadcast %12 : vector<1x128xf32> to vector<2x128xf32>
    %118 = arith.mulf %116, %117 : vector<2x128xf32>
    %119 = arith.negf %118 : vector<2x128xf32>
    %120 = math.exp %119 : vector<2x128xf32>
    %cst_33 = arith.constant 1.000000e+00 : f32
    %121 = vector.broadcast %cst_33 : f32 to vector<2x128xf32>
    %122 = arith.addf %121, %120 : vector<2x128xf32>
    %123 = arith.divf %121, %122 : vector<2x128xf32>
    %124 = vector.broadcast %15 : vector<1x128xf32> to vector<2x128xf32>
    %125 = arith.mulf %123, %124 : vector<2x128xf32>
    %126 = vector.broadcast %18 : vector<1x128xf32> to vector<2x128xf32>
    %127 = arith.addf %125, %126 : vector<2x128xf32>
    %128 = vector.extract_strided_slice %127 {offsets = [0, 0], sizes = [2, 32], strides = [1, 1]} : vector<2x128xf32> to vector<2x32xf32>
    %129 = vector.extract_strided_slice %127 {offsets = [0, 32], sizes = [2, 32], strides = [1, 1]} : vector<2x128xf32> to vector<2x32xf32>
    %130 = vector.extract_strided_slice %127 {offsets = [0, 64], sizes = [2, 32], strides = [1, 1]} : vector<2x128xf32> to vector<2x32xf32>
    %131 = vector.extract_strided_slice %127 {offsets = [0, 96], sizes = [2, 32], strides = [1, 1]} : vector<2x128xf32> to vector<2x32xf32>
    %132 = arith.mulf %129, %104 : vector<2x32xf32>
    %133 = arith.mulf %128, %130 : vector<2x32xf32>
    %134 = arith.addf %132, %133 : vector<2x32xf32>
    %135 = math.tanh %134 : vector<2x32xf32>
    %136 = arith.mulf %131, %135 : vector<2x32xf32>
    %137 = arith.index_cast %c3_i32 : i32 to index
    %c0_34 = arith.constant 0 : index
    %c0_35 = arith.constant 0 : index
    %138 = vector.load %arg3[%137, %c0_34, %c0_35] : memref<8x2x32xf32, #tpu.memory_space<vmem>>, vector<1x2x32xf32>
    %139 = vector.shape_cast %138 : vector<1x2x32xf32> to vector<2x32xf32>
    %140 = vector.shape_cast %136 : vector<2x32xf32> to vector<1x2x32xf32>
    tpu.vector_store %arg3[%137, %c0_34, %c0_35], %140 {strides = array<i32>} : memref<8x2x32xf32, #tpu.memory_space<vmem>>, vector<1x2x32xf32>,
    %c4_i32 = arith.constant 4 : i32
    %141 = arith.index_cast %c4_i32 : i32 to index
    %c0_36 = arith.constant 0 : index
    %c0_37 = arith.constant 0 : index
    %142 = vector.load %arg1[%141, %c0_36, %c0_37] : memref<8x2x128xbf16, #tpu.memory_space<vmem>>, vector<1x2x128xbf16>
    %143 = vector.shape_cast %142 : vector<1x2x128xbf16> to vector<2x128xbf16>
    %144 = arith.extf %143 : vector<2x128xbf16> to vector<2x128xf32>
    %cst_38 = arith.constant dense<0.000000e+00> : vector<2x128xf32>
    %145 = tpu.matmul %136, %3, %cst_38 {dimension_numbers = #tpu.dot_dimension_numbers<[1], [0], [0], [1], [0, 0, 1, 1], [], []>} : vector<2x32xf32>, vector<32x128xf32>, vector<2x128xf32> -> vector<2x128xf32>
    %146 = arith.addf %144, %145 : vector<2x128xf32>
    %147 = vector.broadcast %12 : vector<1x128xf32> to vector<2x128xf32>
    %148 = arith.mulf %146, %147 : vector<2x128xf32>
    %149 = arith.negf %148 : vector<2x128xf32>
    %150 = math.exp %149 : vector<2x128xf32>
    %cst_39 = arith.constant 1.000000e+00 : f32
    %151 = vector.broadcast %cst_39 : f32 to vector<2x128xf32>
    %152 = arith.addf %151, %150 : vector<2x128xf32>
    %153 = arith.divf %151, %152 : vector<2x128xf32>
    %154 = vector.broadcast %15 : vector<1x128xf32> to vector<2x128xf32>
    %155 = arith.mulf %153, %154 : vector<2x128xf32>
    %156 = vector.broadcast %18 : vector<1x128xf32> to vector<2x128xf32>
    %157 = arith.addf %155, %156 : vector<2x128xf32>
    %158 = vector.extract_strided_slice %157 {offsets = [0, 0], sizes = [2, 32], strides = [1, 1]} : vector<2x128xf32> to vector<2x32xf32>
    %159 = vector.extract_strided_slice %157 {offsets = [0, 32], sizes = [2, 32], strides = [1, 1]} : vector<2x128xf32> to vector<2x32xf32>
    %160 = vector.extract_strided_slice %157 {offsets = [0, 64], sizes = [2, 32], strides = [1, 1]} : vector<2x128xf32> to vector<2x32xf32>
    %161 = vector.extract_strided_slice %157 {offsets = [0, 96], sizes = [2, 32], strides = [1, 1]} : vector<2x128xf32> to vector<2x32xf32>
    %162 = arith.mulf %159, %134 : vector<2x32xf32>
    %163 = arith.mulf %158, %160 : vector<2x32xf32>
    %164 = arith.addf %162, %163 : vector<2x32xf32>
    %165 = math.tanh %164 : vector<2x32xf32>
    %166 = arith.mulf %161, %165 : vector<2x32xf32>
    %167 = arith.index_cast %c4_i32 : i32 to index
    %c0_40 = arith.constant 0 : index
    %c0_41 = arith.constant 0 : index
    %168 = vector.load %arg3[%167, %c0_40, %c0_41] : memref<8x2x32xf32, #tpu.memory_space<vmem>>, vector<1x2x32xf32>
    %169 = vector.shape_cast %168 : vector<1x2x32xf32> to vector<2x32xf32>
    %170 = vector.shape_cast %166 : vector<2x32xf32> to vector<1x2x32xf32>
    tpu.vector_store %arg3[%167, %c0_40, %c0_41], %170 {strides = array<i32>} : memref<8x2x32xf32, #tpu.memory_space<vmem>>, vector<1x2x32xf32>,
    %c5_i32 = arith.constant 5 : i32
    %171 = arith.index_cast %c5_i32 : i32 to index
    %c0_42 = arith.constant 0 : index
    %c0_43 = arith.constant 0 : index
    %172 = vector.load %arg1[%171, %c0_42, %c0_43] : memref<8x2x128xbf16, #tpu.memory_space<vmem>>, vector<1x2x128xbf16>
    %173 = vector.shape_cast %172 : vector<1x2x128xbf16> to vector<2x128xbf16>
    %174 = arith.extf %173 : vector<2x128xbf16> to vector<2x128xf32>
    %cst_44 = arith.constant dense<0.000000e+00> : vector<2x128xf32>
    %175 = tpu.matmul %166, %3, %cst_44 {dimension_numbers = #tpu.dot_dimension_numbers<[1], [0], [0], [1], [0, 0, 1, 1], [], []>} : vector<2x32xf32>, vector<32x128xf32>, vector<2x128xf32> -> vector<2x128xf32>
    %176 = arith.addf %174, %175 : vector<2x128xf32>
    %177 = vector.broadcast %12 : vector<1x128xf32> to vector<2x128xf32>
    %178 = arith.mulf %176, %177 : vector<2x128xf32>
    %179 = arith.negf %178 : vector<2x128xf32>
    %180 = math.exp %179 : vector<2x128xf32>
    %cst_45 = arith.constant 1.000000e+00 : f32
    %181 = vector.broadcast %cst_45 : f32 to vector<2x128xf32>
    %182 = arith.addf %181, %180 : vector<2x128xf32>
    %183 = arith.divf %181, %182 : vector<2x128xf32>
    %184 = vector.broadcast %15 : vector<1x128xf32> to vector<2x128xf32>
    %185 = arith.mulf %183, %184 : vector<2x128xf32>
    %186 = vector.broadcast %18 : vector<1x128xf32> to vector<2x128xf32>
    %187 = arith.addf %185, %186 : vector<2x128xf32>
    %188 = vector.extract_strided_slice %187 {offsets = [0, 0], sizes = [2, 32], strides = [1, 1]} : vector<2x128xf32> to vector<2x32xf32>
    %189 = vector.extract_strided_slice %187 {offsets = [0, 32], sizes = [2, 32], strides = [1, 1]} : vector<2x128xf32> to vector<2x32xf32>
    %190 = vector.extract_strided_slice %187 {offsets = [0, 64], sizes = [2, 32], strides = [1, 1]} : vector<2x128xf32> to vector<2x32xf32>
    %191 = vector.extract_strided_slice %187 {offsets = [0, 96], sizes = [2, 32], strides = [1, 1]} : vector<2x128xf32> to vector<2x32xf32>
    %192 = arith.mulf %189, %164 : vector<2x32xf32>
    %193 = arith.mulf %188, %190 : vector<2x32xf32>
    %194 = arith.addf %192, %193 : vector<2x32xf32>
    %195 = math.tanh %194 : vector<2x32xf32>
    %196 = arith.mulf %191, %195 : vector<2x32xf32>
    %197 = arith.index_cast %c5_i32 : i32 to index
    %c0_46 = arith.constant 0 : index
    %c0_47 = arith.constant 0 : index
    %198 = vector.load %arg3[%197, %c0_46, %c0_47] : memref<8x2x32xf32, #tpu.memory_space<vmem>>, vector<1x2x32xf32>
    %199 = vector.shape_cast %198 : vector<1x2x32xf32> to vector<2x32xf32>
    %200 = vector.shape_cast %196 : vector<2x32xf32> to vector<1x2x32xf32>
    tpu.vector_store %arg3[%197, %c0_46, %c0_47], %200 {strides = array<i32>} : memref<8x2x32xf32, #tpu.memory_space<vmem>>, vector<1x2x32xf32>,
    %c6_i32 = arith.constant 6 : i32
    %201 = arith.index_cast %c6_i32 : i32 to index
    %c0_48 = arith.constant 0 : index
    %c0_49 = arith.constant 0 : index
    %202 = vector.load %arg1[%201, %c0_48, %c0_49] : memref<8x2x128xbf16, #tpu.memory_space<vmem>>, vector<1x2x128xbf16>
    %203 = vector.shape_cast %202 : vector<1x2x128xbf16> to vector<2x128xbf16>
    %204 = arith.extf %203 : vector<2x128xbf16> to vector<2x128xf32>
    %cst_50 = arith.constant dense<0.000000e+00> : vector<2x128xf32>
    %205 = tpu.matmul %196, %3, %cst_50 {dimension_numbers = #tpu.dot_dimension_numbers<[1], [0], [0], [1], [0, 0, 1, 1], [], []>} : vector<2x32xf32>, vector<32x128xf32>, vector<2x128xf32> -> vector<2x128xf32>
    %206 = arith.addf %204, %205 : vector<2x128xf32>
    %207 = vector.broadcast %12 : vector<1x128xf32> to vector<2x128xf32>
    %208 = arith.mulf %206, %207 : vector<2x128xf32>
    %209 = arith.negf %208 : vector<2x128xf32>
    %210 = math.exp %209 : vector<2x128xf32>
    %cst_51 = arith.constant 1.000000e+00 : f32
    %211 = vector.broadcast %cst_51 : f32 to vector<2x128xf32>
    %212 = arith.addf %211, %210 : vector<2x128xf32>
    %213 = arith.divf %211, %212 : vector<2x128xf32>
    %214 = vector.broadcast %15 : vector<1x128xf32> to vector<2x128xf32>
    %215 = arith.mulf %213, %214 : vector<2x128xf32>
    %216 = vector.broadcast %18 : vector<1x128xf32> to vector<2x128xf32>
    %217 = arith.addf %215, %216 : vector<2x128xf32>
    %218 = vector.extract_strided_slice %217 {offsets = [0, 0], sizes = [2, 32], strides = [1, 1]} : vector<2x128xf32> to vector<2x32xf32>
    %219 = vector.extract_strided_slice %217 {offsets = [0, 32], sizes = [2, 32], strides = [1, 1]} : vector<2x128xf32> to vector<2x32xf32>
    %220 = vector.extract_strided_slice %217 {offsets = [0, 64], sizes = [2, 32], strides = [1, 1]} : vector<2x128xf32> to vector<2x32xf32>
    %221 = vector.extract_strided_slice %217 {offsets = [0, 96], sizes = [2, 32], strides = [1, 1]} : vector<2x128xf32> to vector<2x32xf32>
    %222 = arith.mulf %219, %194 : vector<2x32xf32>
    %223 = arith.mulf %218, %220 : vector<2x32xf32>
    %224 = arith.addf %222, %223 : vector<2x32xf32>
    %225 = math.tanh %224 : vector<2x32xf32>
    %226 = arith.mulf %221, %225 : vector<2x32xf32>
    %227 = arith.index_cast %c6_i32 : i32 to index
    %c0_52 = arith.constant 0 : index
    %c0_53 = arith.constant 0 : index
    %228 = vector.load %arg3[%227, %c0_52, %c0_53] : memref<8x2x32xf32, #tpu.memory_space<vmem>>, vector<1x2x32xf32>
    %229 = vector.shape_cast %228 : vector<1x2x32xf32> to vector<2x32xf32>
    %230 = vector.shape_cast %226 : vector<2x32xf32> to vector<1x2x32xf32>
    tpu.vector_store %arg3[%227, %c0_52, %c0_53], %230 {strides = array<i32>} : memref<8x2x32xf32, #tpu.memory_space<vmem>>, vector<1x2x32xf32>,
    %c7_i32 = arith.constant 7 : i32
    %231 = arith.index_cast %c7_i32 : i32 to index
    %c0_54 = arith.constant 0 : index
    %c0_55 = arith.constant 0 : index
    %232 = vector.load %arg1[%231, %c0_54, %c0_55] : memref<8x2x128xbf16, #tpu.memory_space<vmem>>, vector<1x2x128xbf16>
    %233 = vector.shape_cast %232 : vector<1x2x128xbf16> to vector<2x128xbf16>
    %234 = arith.extf %233 : vector<2x128xbf16> to vector<2x128xf32>
    %cst_56 = arith.constant dense<0.000000e+00> : vector<2x128xf32>
    %235 = tpu.matmul %226, %3, %cst_56 {dimension_numbers = #tpu.dot_dimension_numbers<[1], [0], [0], [1], [0, 0, 1, 1], [], []>} : vector<2x32xf32>, vector<32x128xf32>, vector<2x128xf32> -> vector<2x128xf32>
    %236 = arith.addf %234, %235 : vector<2x128xf32>
    %237 = vector.broadcast %12 : vector<1x128xf32> to vector<2x128xf32>
    %238 = arith.mulf %236, %237 : vector<2x128xf32>
    %239 = arith.negf %238 : vector<2x128xf32>
    %240 = math.exp %239 : vector<2x128xf32>
    %cst_57 = arith.constant 1.000000e+00 : f32
    %241 = vector.broadcast %cst_57 : f32 to vector<2x128xf32>
    %242 = arith.addf %241, %240 : vector<2x128xf32>
    %243 = arith.divf %241, %242 : vector<2x128xf32>
    %244 = vector.broadcast %15 : vector<1x128xf32> to vector<2x128xf32>
    %245 = arith.mulf %243, %244 : vector<2x128xf32>
    %246 = vector.broadcast %18 : vector<1x128xf32> to vector<2x128xf32>
    %247 = arith.addf %245, %246 : vector<2x128xf32>
    %248 = vector.extract_strided_slice %247 {offsets = [0, 0], sizes = [2, 32], strides = [1, 1]} : vector<2x128xf32> to vector<2x32xf32>
    %249 = vector.extract_strided_slice %247 {offsets = [0, 32], sizes = [2, 32], strides = [1, 1]} : vector<2x128xf32> to vector<2x32xf32>
    %250 = vector.extract_strided_slice %247 {offsets = [0, 64], sizes = [2, 32], strides = [1, 1]} : vector<2x128xf32> to vector<2x32xf32>
    %251 = vector.extract_strided_slice %247 {offsets = [0, 96], sizes = [2, 32], strides = [1, 1]} : vector<2x128xf32> to vector<2x32xf32>
    %252 = arith.mulf %249, %224 : vector<2x32xf32>
    %253 = arith.mulf %248, %250 : vector<2x32xf32>
    %254 = arith.addf %252, %253 : vector<2x32xf32>
    %255 = math.tanh %254 : vector<2x32xf32>
    %256 = arith.mulf %251, %255 : vector<2x32xf32>
    %257 = arith.index_cast %c7_i32 : i32 to index
    %c0_58 = arith.constant 0 : index
    %c0_59 = arith.constant 0 : index
    %258 = vector.load %arg3[%257, %c0_58, %c0_59] : memref<8x2x32xf32, #tpu.memory_space<vmem>>, vector<1x2x32xf32>
    %259 = vector.shape_cast %258 : vector<1x2x32xf32> to vector<2x32xf32>
    %260 = vector.shape_cast %256 : vector<2x32xf32> to vector<1x2x32xf32>
    tpu.vector_store %arg3[%257, %c0_58, %c0_59], %260 {strides = array<i32>} : memref<8x2x32xf32, #tpu.memory_space<vmem>>, vector<1x2x32xf32>,
    %c8_i32 = arith.constant 8 : i32
    %c0_60 = arith.constant 0 : index
    %c0_61 = arith.constant 0 : index
    %261 = vector.load %arg4[%c0_60, %c0_61] : memref<2x32xf32, #tpu.memory_space<vmem>>, vector<2x32xf32>
    tpu.vector_store %arg4[%c0_60, %c0_61], %256 {strides = array<i32>} : memref<2x32xf32, #tpu.memory_space<vmem>>, vector<2x32xf32>,
    %c0_62 = arith.constant 0 : index
    %c0_63 = arith.constant 0 : index
    %262 = vector.load %arg5[%c0_62, %c0_63] : memref<2x32xf32, #tpu.memory_space<vmem>>, vector<2x32xf32>
    tpu.vector_store %arg5[%c0_62, %c0_63], %254 {strides = array<i32>} : memref<2x32xf32, #tpu.memory_space<vmem>>, vector<2x32xf32>,
    return
  }
  func.func @transform_0(%arg0: i32) -> (i32, i32, i32) {
    %c0_i32 = arith.constant 0 : i32
    %c0_i32_0 = arith.constant 0 : i32
    %c0_i32_1 = arith.constant 0 : i32
    return %arg0, %c0_i32, %c0_i32_0 : i32, i32, i32
  }
  func.func @transform_1(%arg0: i32) -> (i32, i32) {
    %c0_i32 = arith.constant 0 : i32
    %c0_i32_0 = arith.constant 0 : i32
    %c0_i32_1 = arith.constant 0 : i32
    return %c0_i32, %c0_i32_0 : i32, i32
  }
  func.func @transform_2(%arg0: i32) -> (i32, i32, i32) {
    %c0_i32 = arith.constant 0 : i32
    %c0_i32_0 = arith.constant 0 : i32
    %c0_i32_1 = arith.constant 0 : i32
    return %arg0, %c0_i32, %c0_i32_0 : i32, i32, i32
  }
}

</mosaic_0001>

<bundles_post_ra>
// kernel: tpu_custom_call.1
= control target key start
LH: loop header
LB: loop body
LE: loop exit
PB: predicated region body
PF: predicated region fallthrough
CT: control target
= control target key end

     0   :  { %7 = vsyncpa [#allocation5], 0  ;;  %s1521_s0 = inlined_call_operand.hbm [shape: bf16[8,2,128], index: 0, kind: input, shape index: {}]   ;;  %s1522_s1 = inlined_call_operand.hbm [shape: f32[32,128], index: 1, kind: input, shape index: {}]   ;;  %s1523_s2 = inlined_call_operand.hbm [shape: f32[8,2,32], index: 2, kind: output, shape index: {}]  }
   0x1   :  { %8 = vsyncpa [#allocation8], 0 }
   0x2   :  { %9 = vsyncpa [#allocation6], 0  ;;  %s1297_s9 = smov [#allocation4]  }
   0x3   :  { %s15_s10 = sshll.u32 %s1297_s9, 4  ;;  %s16_s10 = int_to_ptr.vmem [resolvable:$true] %s15_s10 }
   0x4   :  { %s1239_s11 = scalar_lea.vmem %s16_s10, 128  ;;  %p1244_p1 = scmp.lt.s32.totalorder %s16_s10, %s16_s10 }
   0x5   :  { %p1240_p0 = scmp.ne.s32.totalorder %s16_s10, %s1239_s11  ;;  %p1245_p2 = scmp.lt.s32.totalorder %s1239_s11, %s1239_s11 }
   0x7   :  { %p1246_p3 = por %p1245_p2, %p1244_p1 }
   0x9   :  { %p1247_p4 = pnand %p1246_p3, %p1240_p0 }
   0xb   :  { %1250 = shalt.err (!%p1247_p4)
}
   0xc   :  { %s1298_s12 = smov 16   ;;  %s1299_s13 = smov 1  }
   0xd   :  { %21 = dma.hbm_to_vmem [thread:$0]  %s1521_s0, 128, %s16_s10, [#allocation5], %s1298_s12, %s1298_s12, %s1299_s13  }
   0xe   :  { %s1300_s16 = smov [#allocation7]  }
   0xf   :  { %s27_s17 = sshll.u32 %s1300_s16, 4  ;;  %s28_s17 = int_to_ptr.vmem [resolvable:$true] %s27_s17 }
  0x10   :  { %s1259_s18 = scalar_lea.vmem %s28_s17, 512  ;;  %p1264_p6 = scmp.lt.s32.totalorder %s28_s17, %s28_s17 }
  0x11   :  { %p1260_p5 = scmp.ne.s32.totalorder %s28_s17, %s1259_s18  ;;  %p1265_p7 = scmp.lt.s32.totalorder %s1259_s18, %s1259_s18 }
  0x13   :  { %p1266_p8 = por %p1265_p7, %p1264_p6 }
  0x15   :  { %p1267_p9 = pnand %p1266_p8, %p1260_p5 }
  0x17   :  { %1270 = shalt.err (!%p1267_p9)
}
  0x18   :  { %s1301_s19 = smov 128   ;;  %s1302_s20 = smov 8  }
  0x19   :  { %33 = dma.hbm_to_vmem [thread:$0]  %s1522_s1, 512, %s28_s17, [#allocation8], %s1301_s19, %s1301_s19, %s1302_s20  }
  0x1a   :  { %1291 = dma.done.wait [#allocation5], 128  }
  0x1b   :  { %1292 = vsyncadd [#allocation5], 4294967168 }
  0x1c   :  { %1293 = dma.done.wait [#allocation8], 512  }
  0x1d   :  { %1294 = vsyncadd [#allocation8], 4294966784  ;;  %vm44_vm0 = vcmask 254976   ;;  %v1303_v0 = vmov 0.0   ;;  %vm1304_vm1 = vmmov 0   ;;  %v1343_v1 = vld [vmem:[#allocation7 + $0x18] sm:$0xff]  ;;  %v51_v6 = vlaneseq }
  0x1e   :  { %1080 = vmatprep.subr.mxu0 %v1303_v0  ;;  %1088 = vmatprep.mubr.msk.f32.mxu0 %vm1304_vm1, %v1303_v0  ;;  %45 = vst.msk [vmem:[#allocation2] sm:$0x3] %vm44_vm0, %v1303_v0  ;;  %46 = vst.msk [vmem:[#allocation3] sm:$0x3] %vm44_vm0, %v1303_v0  ;;  %v1345_v2 = vld [vmem:[#allocation7 + $0x10] sm:$0xff]  ;;  %v1350_v3 = vld [vmem:[#allocation7 + $0x8] sm:$0xff] }
  0x1f   :  { %1091 = vmatprep.subr.mxu1 %v1303_v0  ;;  %1099 = vmatprep.mubr.msk.f32.mxu1 %vm1304_vm1, %v1303_v0  ;;  %v1356_v4 = vld [vmem:[#allocation7] sm:$0xff]  ;;  %vm62_vm2 = vcmask 261120   ;;  %v52_v7 = vand.u32 127, %v51_v6  ;;  %v60_v8 = vld [vmem:[#allocation4] sm:$0x1]  ;;  %v1305_v10 = vmov 1.0  }
  0x20   :  { %1081 = vmatpush3.msra.mxu0 %v1343_v1  ;;  %1092 = vmatpush3.msra.mxu1 %v1343_v1  ;;  %v61_v9 = vunpack.c.l.bf16 %v60_v8  ;;  %s1306_s0 = smov 64   ;;  %s1307_s1 = smov 32   ;;  %v1308_v31 = vmov 1983009808   ;;  %v179_v34 = vshrl.u32 %v51_v6, 7 }
  0x21   :  { %1082 = vmatprep.subr.mxu0 %v1303_v0  ;;  %1093 = vmatprep.subr.mxu1 %v1303_v0  ;;  %vm53_vm3 = vcmp.ge.s32.totalorder %v52_v7, 64  ;;  %vm54_vm4 = vcmp.lt.s32.totalorder %v52_v7, 96  ;;  %v176_v32 = vunpack.c.l.s4 %v1308_v31  ;;  %v188_v40 = vld [vmem:[#allocation4 + $0x1] sm:$0x1]  ;;  %v303_v62 = vld [vmem:[#allocation4 + $0x2] sm:$0x1] }
  0x22   :  { %1083 = vmatpush3.msra.mxu0 %v1345_v2  ;;  %1094 = vmatpush3.msra.mxu1 %v1345_v2  ;;  %vm55_vm5 = vmand %vm53_vm3, %vm54_vm4  ;;  %v189_v41 = vunpack.c.l.bf16 %v188_v40  ;;  %v304_v63 = vunpack.c.l.bf16 %v303_v62  ;;  %s1309_s23 = smov 96   ;;  %s1310_s24 = smov [#allocation9]  }
  0x23   :  { %1084 = vmatprep.subr.mxu0 %v1303_v0  ;;  %1095 = vmatprep.subr.mxu1 %v1303_v0  ;;  %v1378_v11 = vsel %vm55_vm5, 2.0, %v1305_v10  ;;  %v1382_v20 = vsel %vm55_vm5, -1.0, %v1303_v0  ;;  %v177_v33 = vunpack.c.0.s8 %v176_v32  ;;  %s1010_s25 = sshll.u32 %s1310_s24, 4  ;;  %s1011_s25 = int_to_ptr.vmem [resolvable:$true] %s1010_s25 }
  0x24   :  { %1085 = vmatpush3.msra.mxu0 %v1350_v3  ;;  %1096 = vmatpush3.msra.mxu1 %v1350_v3  ;;  %s1271_s26 = scalar_lea.vmem %s1011_s25, 256  ;;  %p1276_p11 = scmp.lt.s32.totalorder %s1011_s25, %s1011_s25 }
  0x25   :  { %v58_v5 = vld [vmem:[#allocation2] sm:$0x3]  ;;  %1086 = vmatprep.subr.mxu0 %v1303_v0  ;;  %1097 = vmatprep.subr.mxu1 %v1303_v0  ;;  %v1025_v23 = vld.sshfl [vmem:[#allocation3] sm:$0x3 pattern:$0x76325410]  ;;  %v1390_v35 = vsub.s32 %v177_v33, %v179_v34  ;;  %p1272_p10 = scmp.ne.s32.totalorder %s1011_s25, %s1271_s26  ;;  %p1277_p12 = scmp.lt.s32.totalorder %s1271_s26, %s1271_s26 }
  0x26   :  { %1087 = vmatpush3.msra.mxu0 %v1356_v4  ;;  %1098 = vmatpush3.msra.mxu1 %v1356_v4 }
  0x27   :  { %1089 = vmatmul.mubr.msk.f32.vlgmr.msra.gmra.mxu0 %vm62_vm2, %v58_v5  ;;  %1102 = vmatprep.subr.mxu0 %v1303_v0  ;;  %p1278_p13 = por %p1277_p12, %p1276_p11 }
  0x28   :  { %1103 = vmatpush3.msra.mxu0 %v1343_v1  ;;  %1110 = vmatprep.mubr.msk.f32.mxu0 %vm1304_vm1, %v1303_v0 }
  0x29   :  { %1104 = vmatprep.subr.mxu0 %v1303_v0  ;;  %1113 = vmatprep.subr.mxu1 %v1303_v0  ;;  %p1279_p0 = pnand %p1278_p13, %p1272_p10 }
  0x2a   :  { %1105 = vmatpush3.msra.mxu0 %v1345_v2 }
  0x2b   :  { %1106 = vmatprep.subr.mxu0 %v1303_v0 }
  0x2c   :  { %1107 = vmatpush3.msra.mxu0 %v1350_v3 }
  0x2d   :  { %1108 = vmatprep.subr.mxu0 %v1303_v0 }
  0x2e   :  { %1109 = vmatpush3.msra.mxu0 %v1356_v4 }
  0x2f   :  { %1124 = vmatprep.subr.mxu0 %v1303_v0 }
  0xe7   :  { %v132_v12 = vpop.f32.mrf.mxu0 }
  0xe8   :  { %v136_v13 = vadd.f32 %v132_v12, %v61_v9 }
  0xe9   :  { %v1090_v14 = vpop.f32.mrf.mxu0 }
  0xea   :  { %v137_v15 = vmul.f32 %v136_v13, %v1378_v11 }
  0xec   :  { %v1024_v16 = vmul.f32 -1.442695, %v137_v15 }
  0xee   :  { %1183 = vpow2.f32 %v1024_v16 }
  0xfb   :  { %v1184_v17 = vpop.eup %1183 }
  0xfc   :  { %v141_v18 = vadd.f32 1.0, %v1184_v17 }
  0xfe   :  { %1185 = vrcp.f32 %v141_v18 }
 0x10b   :  { %v1186_v19 = vpop.eup %1185 }
 0x10c   :  { %v144_v21 = vmul.f32 %v1186_v19, %v1378_v11 }
 0x10e   :  { %v145_v22 = vadd.f32 %v144_v21, %v1382_v20 }
 0x110   :  { %159 = vrot.lane.b32.xlu0 %v145_v22, %s1306_s0 }
 0x114   :  { %154 = vrot.lane.b32.xlu0 %v1025_v23, %s1307_s1 }
 0x182   :  { %v160_v24 = vpop.permute.xlu0 %159 }
 0x183   :  { %v162_v25 = vmul.f32 %v160_v24, %v145_v22 }
 0x185   :  { %164 = vrot.lane.b32.xlu1 %v162_v25, %s1307_s1 }
 0x186   :  { %v155_v26 = vpop.permute.xlu0 %154 }
 0x187   :  { %v157_v27 = vmul.f32 %v155_v26, %v145_v22 }
 0x1f7   :  { %v165_v28 = vpop.permute.xlu1 %164 }
 0x1f8   :  { %v167_v29 = vadd.f32 %v165_v28, %v157_v27  ;;  %v418_v27 = vld [vmem:[#allocation4 + $0x3] sm:$0x1] }
 0x1f9   :  { %v419_v28 = vunpack.c.l.bf16 %v418_v27 }
 0x1fa   :  { %1187 = vtanh.f32 %v167_v29 }
 0x207   :  { %v1188_v30 = vpop.eup %1187 }
 0x208   :  { %170 = vrot.lane.b32.xlu1 %v1188_v30, %s1306_s0 }
 0x27a   :  { %v171_v36 = vpop.permute.xlu1 %170 }
 0x27b   :  { %v173_v37 = vmul.f32 %v171_v36, %v145_v22 }
 0x27d   :  { %v181_v38 = vrot.slane %v173_v37, %v1390_v35 }
 0x27f   :  { %182 = vrot.lane.b32.xlu0 %v181_v38, %s1307_s1 }
 0x2f1   :  { %v183_v39 = vpop.permute.xlu0 %182 }
 0x2f2   :  { %186 = vst.msk [vmem:[#allocation9] sm:$0x3] %vm44_vm0, %v183_v39  ;;  %1100 = vmatmul.mubr.msk.f32.vlgmr.msra.gmra.mxu1 %vm62_vm2, %v183_v39 }
 0x2f3   :  { %1114 = vmatpush3.msra.mxu1 %v1343_v1  ;;  %1121 = vmatprep.mubr.msk.f32.mxu1 %vm1304_vm1, %v1303_v0 }
 0x2f4   :  { %1115 = vmatprep.subr.mxu1 %v1303_v0 }
 0x2f5   :  { %1116 = vmatpush3.msra.mxu1 %v1345_v2 }
 0x2f6   :  { %1117 = vmatprep.subr.mxu1 %v1303_v0 }
 0x2f7   :  { %1118 = vmatpush3.msra.mxu1 %v1350_v3 }
 0x2f8   :  { %1119 = vmatprep.subr.mxu1 %v1303_v0 }
 0x2f9   :  { %1120 = vmatpush3.msra.mxu1 %v1356_v4 }
 0x2fa   :  { %1135 = vmatprep.subr.mxu1 %v1303_v0 }
 0x3b2   :  { %v258_v42 = vpop.f32.mrf.mxu1 }
 0x3b3   :  { %v262_v43 = vadd.f32 %v258_v42, %v189_v41 }
 0x3b4   :  { %v1101_v44 = vpop.f32.mrf.mxu1 }
 0x3b5   :  { %v263_v45 = vmul.f32 %v262_v43, %v1378_v11 }
 0x3b7   :  { %v1027_v46 = vmul.f32 -1.442695, %v263_v45 }
 0x3b9   :  { %1189 = vpow2.f32 %v1027_v46 }
 0x3c6   :  { %v1190_v47 = vpop.eup %1189 }
 0x3c7   :  { %v267_v48 = vadd.f32 1.0, %v1190_v47 }
 0x3c9   :  { %1191 = vrcp.f32 %v267_v48 }
 0x3d6   :  { %v1192_v49 = vpop.eup %1191 }
 0x3d7   :  { %v270_v50 = vmul.f32 %v1192_v49, %v1378_v11 }
 0x3d9   :  { %v271_v51 = vadd.f32 %v270_v50, %v1382_v20  ;;  %v533_v50 = vld [vmem:[#allocation4 + $0x4] sm:$0x1] }
 0x3db   :  { %274 = vrot.lane.b32.xlu1 %v271_v51, %s1306_s0  ;;  %v272_v54 = vmul.f32 %v271_v51, %v167_v29 }
 0x44d   :  { %v275_v52 = vpop.permute.xlu1 %274 }
 0x44e   :  { %v277_v53 = vmul.f32 %v275_v52, %v271_v51 }
 0x450   :  { %279 = vrot.lane.b32.xlu0 %v277_v53, %s1307_s1 }
 0x4c2   :  { %v280_v55 = vpop.permute.xlu0 %279 }
 0x4c3   :  { %v282_v56 = vadd.f32 %v280_v55, %v272_v54 }
 0x4c5   :  { %1193 = vtanh.f32 %v282_v56 }
 0x4d2   :  { %v1194_v57 = vpop.eup %1193 }
 0x4d3   :  { %285 = vrot.lane.b32.xlu1 %v1194_v57, %s1306_s0 }
 0x545   :  { %v286_v58 = vpop.permute.xlu1 %285 }
 0x546   :  { %v288_v59 = vmul.f32 %v286_v58, %v271_v51  ;;  %v534_v51 = vunpack.c.l.bf16 %v533_v50 }
 0x548   :  { %v296_v60 = vrot.slane %v288_v59, %v1390_v35 }
 0x54a   :  { %297 = vrot.lane.b32.xlu0 %v296_v60, %s1307_s1 }
 0x5bc   :  { %v298_v61 = vpop.permute.xlu0 %297 }
 0x5bd   :  { %301 = vst.msk [vmem:[#allocation9 + $0x2] sm:$0x3] %vm44_vm0, %v298_v61  ;;  %1111 = vmatmul.mubr.msk.f32.vlgmr.msra.gmra.mxu0 %vm62_vm2, %v298_v61 }
 0x5be   :  { %1125 = vmatpush3.msra.mxu0 %v1343_v1  ;;  %1132 = vmatprep.mubr.msk.f32.mxu0 %vm1304_vm1, %v1303_v0 }
 0x5bf   :  { %1126 = vmatprep.subr.mxu0 %v1303_v0 }
 0x5c0   :  { %1127 = vmatpush3.msra.mxu0 %v1345_v2 }
 0x5c1   :  { %1128 = vmatprep.subr.mxu0 %v1303_v0 }
 0x5c2   :  { %1129 = vmatpush3.msra.mxu0 %v1350_v3 }
 0x5c3   :  { %1130 = vmatprep.subr.mxu0 %v1303_v0 }
 0x5c4   :  { %1131 = vmatpush3.msra.mxu0 %v1356_v4 }
 0x5c5   :  { %1146 = vmatprep.subr.mxu0 %v1303_v0 }
 0x67d   :  { %v373_v5 = vpop.f32.mrf.mxu0 }
 0x67e   :  { %v377_v6 = vadd.f32 %v373_v5, %v304_v63 }
 0x67f   :  { %v1112_v7 = vpop.f32.mrf.mxu0 }
 0x680   :  { %v378_v8 = vmul.f32 %v377_v6, %v1378_v11 }
 0x682   :  { %v1029_v9 = vmul.f32 -1.442695, %v378_v8 }
 0x684   :  { %1195 = vpow2.f32 %v1029_v9 }
 0x691   :  { %v1196_v10 = vpop.eup %1195 }
 0x692   :  { %v382_v12 = vadd.f32 1.0, %v1196_v10 }
 0x694   :  { %1197 = vrcp.f32 %v382_v12 }
 0x6a1   :  { %v1198_v13 = vpop.eup %1197 }
 0x6a2   :  { %v385_v14 = vmul.f32 %v1198_v13, %v1378_v11 }
 0x6a4   :  { %v386_v15 = vadd.f32 %v385_v14, %v1382_v20  ;;  %v648_v14 = vld [vmem:[#allocation4 + $0x5] sm:$0x1] }
 0x6a6   :  { %389 = vrot.lane.b32.xlu1 %v386_v15, %s1306_s0  ;;  %v387_v18 = vmul.f32 %v386_v15, %v282_v56 }
 0x718   :  { %v390_v16 = vpop.permute.xlu1 %389 }
 0x719   :  { %v392_v17 = vmul.f32 %v390_v16, %v386_v15 }
 0x71b   :  { %394 = vrot.lane.b32.xlu0 %v392_v17, %s1307_s1 }
 0x78d   :  { %v395_v19 = vpop.permute.xlu0 %394 }
 0x78e   :  { %v397_v21 = vadd.f32 %v395_v19, %v387_v18 }
 0x790   :  { %1199 = vtanh.f32 %v397_v21 }
 0x79d   :  { %v1200_v22 = vpop.eup %1199 }
 0x79e   :  { %400 = vrot.lane.b32.xlu1 %v1200_v22, %s1306_s0 }
 0x810   :  { %v401_v23 = vpop.permute.xlu1 %400 }
 0x811   :  { %v403_v24 = vmul.f32 %v401_v23, %v386_v15  ;;  %v649_v15 = vunpack.c.l.bf16 %v648_v14 }
 0x813   :  { %v411_v25 = vrot.slane %v403_v24, %v1390_v35 }
 0x815   :  { %412 = vrot.lane.b32.xlu0 %v411_v25, %s1307_s1 }
 0x887   :  { %v413_v26 = vpop.permute.xlu0 %412 }
 0x888   :  { %416 = vst.msk [vmem:[#allocation9 + $0x4] sm:$0x3] %vm44_vm0, %v413_v26  ;;  %1122 = vmatmul.mubr.msk.f32.vlgmr.msra.gmra.mxu1 %vm62_vm2, %v413_v26 }
 0x889   :  { %1136 = vmatpush3.msra.mxu1 %v1343_v1  ;;  %1143 = vmatprep.mubr.msk.f32.mxu1 %vm1304_vm1, %v1303_v0 }
 0x88a   :  { %1137 = vmatprep.subr.mxu1 %v1303_v0 }
 0x88b   :  { %1138 = vmatpush3.msra.mxu1 %v1345_v2 }
 0x88c   :  { %1139 = vmatprep.subr.mxu1 %v1303_v0 }
 0x88d   :  { %1140 = vmatpush3.msra.mxu1 %v1350_v3 }
 0x88e   :  { %1141 = vmatprep.subr.mxu1 %v1303_v0 }
 0x88f   :  { %1142 = vmatpush3.msra.mxu1 %v1356_v4 }
 0x890   :  { %1157 = vmatprep.subr.mxu1 %v1303_v0 }
 0x948   :  { %v488_v29 = vpop.f32.mrf.mxu1 }
 0x949   :  { %v492_v30 = vadd.f32 %v488_v29, %v419_v28 }
 0x94a   :  { %v1123_v31 = vpop.f32.mrf.mxu1 }
 0x94b   :  { %v493_v32 = vmul.f32 %v492_v30, %v1378_v11 }
 0x94d   :  { %v1031_v33 = vmul.f32 -1.442695, %v493_v32  ;;  %v763_v32 = vld [vmem:[#allocation4 + $0x6] sm:$0x1] }
 0x94f   :  { %1201 = vpow2.f32 %v1031_v33  ;;  %v764_v33 = vunpack.c.l.bf16 %v763_v32 }
 0x95c   :  { %v1202_v34 = vpop.eup %1201 }
 0x95d   :  { %v497_v36 = vadd.f32 1.0, %v1202_v34 }
 0x95f   :  { %1203 = vrcp.f32 %v497_v36 }
 0x96c   :  { %v1204_v37 = vpop.eup %1203 }
 0x96d   :  { %v500_v38 = vmul.f32 %v1204_v37, %v1378_v11 }
 0x96f   :  { %v501_v39 = vadd.f32 %v500_v38, %v1382_v20 }
 0x971   :  { %504 = vrot.lane.b32.xlu1 %v501_v39, %s1306_s0  ;;  %v502_v42 = vmul.f32 %v501_v39, %v397_v21 }
 0x9e3   :  { %v505_v40 = vpop.permute.xlu1 %504 }
 0x9e4   :  { %v507_v41 = vmul.f32 %v505_v40, %v501_v39 }
 0x9e6   :  { %509 = vrot.lane.b32.xlu0 %v507_v41, %s1307_s1 }
 0xa58   :  { %v510_v43 = vpop.permute.xlu0 %509 }
 0xa59   :  { %v512_v44 = vadd.f32 %v510_v43, %v502_v42 }
 0xa5b   :  { %1205 = vtanh.f32 %v512_v44 }
 0xa68   :  { %v1206_v45 = vpop.eup %1205 }
 0xa69   :  { %515 = vrot.lane.b32.xlu1 %v1206_v45, %s1306_s0 }
 0xadb   :  { %v516_v46 = vpop.permute.xlu1 %515 }
 0xadc   :  { %v518_v47 = vmul.f32 %v516_v46, %v501_v39 }
 0xade   :  { %v526_v48 = vrot.slane %v518_v47, %v1390_v35 }
 0xae0   :  { %527 = vrot.lane.b32.xlu0 %v526_v48, %s1307_s1 }
 0xb52   :  { %v528_v49 = vpop.permute.xlu0 %527 }
 0xb53   :  { %531 = vst.msk [vmem:[#allocation9 + $0x6] sm:$0x3] %vm44_vm0, %v528_v49  ;;  %1133 = vmatmul.mubr.msk.f32.vlgmr.msra.gmra.mxu0 %vm62_vm2, %v528_v49 }
 0xb54   :  { %1147 = vmatpush3.msra.mxu0 %v1343_v1  ;;  %1154 = vmatprep.mubr.msk.f32.mxu0 %vm1304_vm1, %v1303_v0 }
 0xb55   :  { %1148 = vmatprep.subr.mxu0 %v1303_v0 }
 0xb56   :  { %1149 = vmatpush3.msra.mxu0 %v1345_v2 }
 0xb57   :  { %1150 = vmatprep.subr.mxu0 %v1303_v0 }
 0xb58   :  { %1151 = vmatpush3.msra.mxu0 %v1350_v3 }
 0xb59   :  { %1152 = vmatprep.subr.mxu0 %v1303_v0 }
 0xb5a   :  { %1153 = vmatpush3.msra.mxu0 %v1356_v4 }
 0xc13   :  { %v603_v52 = vpop.f32.mrf.mxu0 }
 0xc14   :  { %v607_v53 = vadd.f32 %v603_v52, %v534_v51 }
 0xc15   :  { %v1134_v54 = vpop.f32.mrf.mxu0 }
 0xc16   :  { %v608_v55 = vmul.f32 %v607_v53, %v1378_v11 }
 0xc18   :  { %v1033_v56 = vmul.f32 -1.442695, %v608_v55  ;;  %v878_v55 = vld [vmem:[#allocation4 + $0x7] sm:$0x1] }
 0xc1a   :  { %1207 = vpow2.f32 %v1033_v56  ;;  %v879_v56 = vunpack.c.l.bf16 %v878_v55 }
 0xc27   :  { %v1208_v57 = vpop.eup %1207 }
 0xc28   :  { %v612_v58 = vadd.f32 1.0, %v1208_v57 }
 0xc2a   :  { %1209 = vrcp.f32 %v612_v58 }
 0xc37   :  { %v1210_v59 = vpop.eup %1209 }
 0xc38   :  { %v615_v60 = vmul.f32 %v1210_v59, %v1378_v11 }
 0xc3a   :  { %v616_v61 = vadd.f32 %v615_v60, %v1382_v20 }
 0xc3c   :  { %619 = vrot.lane.b32.xlu1 %v616_v61, %s1306_s0  ;;  %v617_v5 = vmul.f32 %v616_v61, %v512_v44 }
 0xcae   :  { %v620_v62 = vpop.permute.xlu1 %619 }
 0xcaf   :  { %v622_v63 = vmul.f32 %v620_v62, %v616_v61 }
 0xcb1   :  { %624 = vrot.lane.b32.xlu0 %v622_v63, %s1307_s1 }
 0xd23   :  { %v625_v6 = vpop.permute.xlu0 %624 }
 0xd24   :  { %v627_v7 = vadd.f32 %v625_v6, %v617_v5 }
 0xd26   :  { %1211 = vtanh.f32 %v627_v7 }
 0xd33   :  { %v1212_v8 = vpop.eup %1211 }
 0xd34   :  { %630 = vrot.lane.b32.xlu1 %v1212_v8, %s1306_s0 }
 0xda6   :  { %v631_v9 = vpop.permute.xlu1 %630 }
 0xda7   :  { %v633_v10 = vmul.f32 %v631_v9, %v616_v61 }
 0xda9   :  { %v641_v12 = vrot.slane %v633_v10, %v1390_v35 }
 0xdab   :  { %642 = vrot.lane.b32.xlu0 %v641_v12, %s1307_s1 }
 0xe1d   :  { %v643_v13 = vpop.permute.xlu0 %642 }
 0xe1e   :  { %646 = vst.msk [vmem:[#allocation9 + $0x8] sm:$0x3] %vm44_vm0, %v643_v13  ;;  %1144 = vmatmul.mubr.msk.f32.vlgmr.msra.gmra.mxu1 %vm62_vm2, %v643_v13 }
 0xe1f   :  { %1158 = vmatpush3.msra.mxu1 %v1343_v1  ;;  %1165 = vmatprep.mubr.msk.f32.mxu1 %vm1304_vm1, %v1303_v0 }
 0xe20   :  { %1159 = vmatprep.subr.mxu1 %v1303_v0 }
 0xe21   :  { %1160 = vmatpush3.msra.mxu1 %v1345_v2 }
 0xe22   :  { %1161 = vmatprep.subr.mxu1 %v1303_v0 }
 0xe23   :  { %1162 = vmatpush3.msra.mxu1 %v1350_v3 }
 0xe24   :  { %1163 = vmatprep.subr.mxu1 %v1303_v0 }
 0xe25   :  { %1164 = vmatpush3.msra.mxu1 %v1356_v4 }
 0xede   :  { %v718_v16 = vpop.f32.mrf.mxu1 }
 0xedf   :  { %v722_v17 = vadd.f32 %v718_v16, %v649_v15 }
 0xee0   :  { %v1145_v1 = vpop.f32.mrf.mxu1 }
 0xee1   :  { %v723_v18 = vmul.f32 %v722_v17, %v1378_v11 }
 0xee3   :  { %v1035_v19 = vmul.f32 -1.442695, %v723_v18 }
 0xee5   :  { %1213 = vpow2.f32 %v1035_v19 }
 0xef2   :  { %v1214_v21 = vpop.eup %1213 }
 0xef3   :  { %v727_v22 = vadd.f32 1.0, %v1214_v21 }
 0xef5   :  { %1215 = vrcp.f32 %v727_v22 }
 0xf02   :  { %v1216_v2 = vpop.eup %1215 }
 0xf03   :  { %v730_v23 = vmul.f32 %v1216_v2, %v1378_v11 }
 0xf05   :  { %v731_v3 = vadd.f32 %v730_v23, %v1382_v20 }
 0xf07   :  { %734 = vrot.lane.b32.xlu1 %v731_v3, %s1306_s0  ;;  %v732_v24 = vmul.f32 %v731_v3, %v627_v7 }
 0xf79   :  { %v735_v0 = vpop.permute.xlu1 %734 }
 0xf7a   :  { %v737_v4 = vmul.f32 %v735_v0, %v731_v3 }
 0xf7c   :  { %739 = vrot.lane.b32.xlu0 %v737_v4, %s1307_s1 }
 0xfee   :  { %v740_v25 = vpop.permute.xlu0 %739 }
 0xfef   :  { %v742_v26 = vadd.f32 %v740_v25, %v732_v24 }
 0xff1   :  { %1217 = vtanh.f32 %v742_v26 }
 0xffe   :  { %v1218_v27 = vpop.eup %1217 }
 0xfff   :  { %745 = vrot.lane.b32.xlu1 %v1218_v27, %s1306_s0 }
0x1071   :  { %v746_v28 = vpop.permute.xlu1 %745 }
0x1072   :  { %v748_v29 = vmul.f32 %v746_v28, %v731_v3 }
0x1074   :  { %v756_v30 = vrot.slane %v748_v29, %v1390_v35 }
0x1076   :  { %757 = vrot.lane.b32.xlu0 %v756_v30, %s1307_s1 }
0x10e8   :  { %v758_v31 = vpop.permute.xlu0 %757 }
0x10e9   :  { %761 = vst.msk [vmem:[#allocation9 + $0xa] sm:$0x3] %vm44_vm0, %v758_v31  ;;  %1155 = vmatmul.mubr.msk.f32.vlgmr.msra.gmra.mxu0 %vm62_vm2, %v758_v31 }
0x11a9   :  { %v833_v34 = vpop.f32.mrf.mxu0 }
0x11aa   :  { %v837_v36 = vadd.f32 %v833_v34, %v764_v33 }
0x11ab   :  { %v1156_v37 = vpop.f32.mrf.mxu0 }
0x11ac   :  { %v838_v38 = vmul.f32 %v837_v36, %v1378_v11 }
0x11ae   :  { %v1037_v39 = vmul.f32 -1.442695, %v838_v38 }
0x11b0   :  { %1219 = vpow2.f32 %v1037_v39 }
0x11bd   :  { %v1220_v40 = vpop.eup %1219 }
0x11be   :  { %v842_v41 = vadd.f32 1.0, %v1220_v40 }
0x11c0   :  { %1221 = vrcp.f32 %v842_v41 }
0x11cd   :  { %v1222_v42 = vpop.eup %1221 }
0x11ce   :  { %v845_v43 = vmul.f32 %v1222_v42, %v1378_v11 }
0x11d0   :  { %v846_v44 = vadd.f32 %v845_v43, %v1382_v20 }
0x11d2   :  { %849 = vrot.lane.b32.xlu1 %v846_v44, %s1306_s0  ;;  %v847_v47 = vmul.f32 %v846_v44, %v742_v26 }
0x1244   :  { %v850_v45 = vpop.permute.xlu1 %849 }
0x1245   :  { %v852_v46 = vmul.f32 %v850_v45, %v846_v44 }
0x1247   :  { %854 = vrot.lane.b32.xlu0 %v852_v46, %s1307_s1 }
0x12b9   :  { %v855_v48 = vpop.permute.xlu0 %854 }
0x12ba   :  { %v857_v49 = vadd.f32 %v855_v48, %v847_v47 }
0x12bc   :  { %1223 = vtanh.f32 %v857_v49 }
0x12c9   :  { %v1224_v50 = vpop.eup %1223 }
0x12ca   :  { %860 = vrot.lane.b32.xlu1 %v1224_v50, %s1306_s0 }
0x133c   :  { %v861_v51 = vpop.permute.xlu1 %860 }
0x133d   :  { %v863_v52 = vmul.f32 %v861_v51, %v846_v44 }
0x133f   :  { %v871_v53 = vrot.slane %v863_v52, %v1390_v35 }
0x1341   :  { %872 = vrot.lane.b32.xlu0 %v871_v53, %s1307_s1 }
0x13b3   :  { %v873_v54 = vpop.permute.xlu0 %872 }
0x13b4   :  { %876 = vst.msk [vmem:[#allocation9 + $0xc] sm:$0x3] %vm44_vm0, %v873_v54  ;;  %1166 = vmatmul.mubr.msk.f32.vlgmr.msra.gmra.mxu1 %vm62_vm2, %v873_v54 }
0x1474   :  { %v948_v57 = vpop.f32.mrf.mxu1 }
0x1475   :  { %v952_v58 = vadd.f32 %v948_v57, %v879_v56 }
0x1476   :  { %v1167_v59 = vpop.f32.mrf.mxu1 }
0x1477   :  { %v953_v60 = vmul.f32 %v952_v58, %v1378_v11 }
0x1479   :  { %v1039_v61 = vmul.f32 -1.442695, %v953_v60 }
0x147b   :  { %1225 = vpow2.f32 %v1039_v61 }
0x1488   :  { %v1226_v62 = vpop.eup %1225 }
0x1489   :  { %v957_v63 = vadd.f32 1.0, %v1226_v62 }
0x148b   :  { %1227 = vrcp.f32 %v957_v63 }
0x1498   :  { %v1228_v5 = vpop.eup %1227 }
0x1499   :  { %v960_v6 = vmul.f32 %v1228_v5, %v1378_v11 }
0x149b   :  { %v961_v7 = vadd.f32 %v960_v6, %v1382_v20 }
0x149d   :  { %964 = vrot.lane.b32.xlu1 %v961_v7, %s1306_s0  ;;  %v962_v10 = vmul.f32 %v961_v7, %v857_v49 }
0x150f   :  { %v965_v8 = vpop.permute.xlu1 %964 }
0x1510   :  { %v967_v9 = vmul.f32 %v965_v8, %v961_v7 }
0x1512   :  { %969 = vrot.lane.b32.xlu0 %v967_v9, %s1307_s1 }
0x1584   :  { %v970_v12 = vpop.permute.xlu0 %969 }
0x1585   :  { %v972_v13 = vadd.f32 %v970_v12, %v962_v10 }
0x1587   :  { %1229 = vtanh.f32 %v972_v13  ;;  %v1000_v15 = vrot.slane %v972_v13, %v1390_v35 }
0x1594   :  { %v1230_v14 = vpop.eup %1229 }
0x1595   :  { %975 = vrot.lane.b32.xlu1 %v1230_v14, %s1306_s0 }
0x1599   :  { %1001 = vrot.lane.b32.xlu1 %v1000_v15, %s1309_s23 }
0x1607   :  { %v976_v11 = vpop.permute.xlu1 %975 }
0x1608   :  { %v978_v16 = vmul.f32 %v976_v11, %v961_v7 }
0x160a   :  { %v986_v20 = vrot.slane %v978_v16, %v1390_v35 }
0x160b   :  { %v1002_v17 = vpop.permute.xlu1 %1001 }
0x160c   :  { %1004 = vst.msk [vmem:[#allocation3] sm:$0x3] %vm44_vm0, %v1002_v17  ;;  %987 = vrot.lane.b32.xlu0 %v986_v20, %s1307_s1 }
0x167e   :  { %v988_v1 = vpop.permute.xlu0 %987 }
0x167f   :  { %991 = vst.msk [vmem:[#allocation9 + $0xe] sm:$0x3] %vm44_vm0, %v988_v1  ;;  %992 = vst.msk [vmem:[#allocation2] sm:$0x3] %vm44_vm0, %v988_v1 }
0x1680   :  { %1282 = shalt.err (!%p1279_p0)
}
0x1681   :  { %s1311_s27 = smov 2  }
0x1682   :  { %1016 = dma.vmem_to_hbm [thread:$0]  %s1011_s25, 256, %s1523_s2, [#allocation6], %s1307_s1, %s1307_s1, %s1311_s27  }
0x1683   :  { %1295 = dma.done.wait [#allocation6], 256  }
0x1684   :  { %1296 = vsyncadd [#allocation6], 4294967040 }
0x1685   :  { %1020 = vsyncpa [#allocation5], 1 }
0x1686   :  { %1021 = vsyncpa [#allocation8], 1 }
0x1687   :  { %1022 = vsyncpa [#allocation6], 1 }

</bundles_post_ra>
